<compile_context>
chip_gen: v5e
topology: v5e:2x2
jax: 0.10.0
libtpu: 0.0.40
codegen_flags: <defaults>
</compile_context>

<pallas_src>
import math

import jax
import jax.numpy as jnp
import numpy as np
from jax import lax
from jax.experimental import pallas as pl
from jax.experimental.pallas import tpu as pltpu

IN_F, HID_F, OUT_F = 3, 16, 26

SUBLANE = 8          # f32 sublane quantum; batch rows live on sublanes in HBM blocks
MAX_TILE_B = 8192    # natural-layout VMEM blocks are lane-padded to 128 -> keep modest
SPLIT_MIN_B = 2048   # batches at least this big get >= 2 grid steps (v7x: 2 TensorCores)


def _round_up(x, m):
    return (x + m - 1) // m * m


def _cdiv(a, b):
    return (a + b - 1) // b


def mlp_kernel(x_ref, w1_ref, b1_ref, w2_ref, b2_ref, o_ref):
    """One batch tile of relu(x @ W1 + b1) @ W2 + b2.

    x_ref:  (tile_b, 3)    straight from HBM, no wrapper copy
    w1_ref: (3, 16)        b1_ref: (16, 1)
    w2_ref: (16, 26)       b2_ref: (1, 26)
    o_ref:  (tile_b, 26)   written directly in the caller's (B, 26) layout
    """
    # Layer 1, lane-dense (batch on the 128-wide lane axis):
    #   hT[i, b] = sum_k W1[k, i] * x[b, k]              -> (16, tile_b)
    hT = lax.dot_general(
        w1_ref[...], x_ref[...],
        dimension_numbers=(((0,), (1,)), ((), ())),
        preferred_element_type=jnp.float32)
    hT = jnp.maximum(hT + b1_ref[...], 0.0)              # bias + ReLU on dense lanes

    # Layer 2 produced directly in the output orientation (no wrapper transpose):
    #   o[b, n] = sum_i hT[i, b] * W2[i, n]              -> (tile_b, 26)
    o = lax.dot_general(
        hT, w2_ref[...],
        dimension_numbers=(((0,), (0,)), ((), ())),
        preferred_element_type=jnp.float32)
    o_ref[...] = (o + b2_ref[...]).astype(o_ref.dtype)


@jax.jit
def simple_model_forward(x, w1, b1, w2, b2):
    """x: (B, 3) f32; w1: (3, 16); b1: (16,); w2: (16, 26); b2: (26,).
    Returns (B, 26) f32 == relu(x @ w1 + b1) @ w2 + b2."""
    B = x.shape[0]

    # ---- Tiling: batch on sublanes -> quantum is 8 rows (f32). ----
    b_min = _round_up(max(B, 1), SUBLANE)
    num_tiles = _cdiv(b_min, MAX_TILE_B)
    if num_tiles == 1 and b_min >= SPLIT_MIN_B:
        num_tiles = 2                      # v7x: keep both TensorCores busy
    tile_b = _round_up(_cdiv(b_min, num_tiles), SUBLANE)
    b_padded = tile_b * num_tiles          # waste <= num_tiles * 8 rows

    # Only copy x / slice the output when padding is actually required.
    xp = x if b_padded == B else jnp.pad(x, ((0, b_padded - B), (0, 0)))

    b1c = b1.reshape(HID_F, 1)             # (16, 1) column -> lane broadcast in-kernel
    b2r = b2.reshape(1, OUT_F)             # (1, 26) row    -> sublane broadcast in-kernel

    # VMEM budget: x/out blocks lane-pad to 128 lanes = 512 B per batch row per
    # buffer; 2x double-buffered in + 2x out + compute temps -> ~6 * 512 B/row.
    # Budget generously (8 * 512 B/row + 8 MiB slack), cap below v7x's 64 MiB.
    vmem_bytes = int(min(56 * 1024 * 1024, 8 * tile_b * 512 + (8 << 20)))

    def resident(shape):
        # Full-array block, same VMEM tile every grid step (stays resident).
        return pl.BlockSpec(shape, lambda i: (0, 0))

    out = pl.pallas_call(
        mlp_kernel,
        out_shape=jax.ShapeDtypeStruct((b_padded, OUT_F), jnp.float32),
        grid=(num_tiles,),
        in_specs=[
            pl.BlockSpec((tile_b, IN_F), lambda i: (i, 0)),   # x tile, natural layout
            resident((IN_F, HID_F)),                          # W1
            resident((HID_F, 1)),                             # b1 column
            resident((HID_F, OUT_F)),                         # W2
            resident((1, OUT_F)),                             # b2 row
        ],
        out_specs=pl.BlockSpec((tile_b, OUT_F), lambda i: (i, 0)),
        compiler_params=pltpu.CompilerParams(
            dimension_semantics=("parallel",),
            vmem_limit_bytes=vmem_bytes,
        ),
    )(xp, w1, b1c, w2, b2r)

    return out if b_padded == B else out[:B]


def init_params(key):
    """Deterministic init mimicking torch.nn.Linear defaults:
    U(-1/sqrt(fan_in), 1/sqrt(fan_in)) for both weight and bias."""
    k1, k2, k3, k4 = jax.random.split(key, 4)
    bound1 = 1.0 / math.sqrt(3.0)
    w1 = jax.random.uniform(k1, (IN_F, HID_F), jnp.float32, -bound1, bound1)
    b1 = jax.random.uniform(k2, (HID_F,), jnp.float32, -bound1, bound1)
    bound2 = 1.0 / math.sqrt(16.0)
    w2 = jax.random.uniform(k3, (HID_F, OUT_F), jnp.float32, -bound2, bound2)
    b2 = jax.random.uniform(k4, (OUT_F,), jnp.float32, -bound2, bound2)
    return w1, b1, w2, b2


def _host_ref(x, w1, b1, w2, b2):
    """Exact float64 reference on host (avoids any TPU matmul-precision mode)."""
    xn, w1n, b1n = np.asarray(x, np.float64), np.asarray(w1, np.float64), np.asarray(b1, np.float64)
    w2n, b2n = np.asarray(w2, np.float64), np.asarray(b2, np.float64)
    return np.maximum(xn @ w1n + b1n, 0.0) @ w2n + b2n


if __name__ == "__main__":
    key = jax.random.PRNGKey(0)
    kx, kp, kx2 = jax.random.split(key, 3)
    w1, b1, w2, b2 = init_params(kp)

    # Small demo batch: 8 rows -> single tile, no padding, no wrapper copies.
    B = 8
    x = jax.random.normal(kx, (B, IN_F), jnp.float32)
    out = jax.block_until_ready(simple_model_forward(x, w1, b1, w2, b2))
    ref = _host_ref(x, w1, b1, w2, b2)
    assert out.shape == (B, OUT_F)
    # Tolerance accommodates any bf16-pass MXU precision mode; structural errors
    # (wrong transpose / bias wiring) would be orders of magnitude larger.
    assert np.allclose(np.asarray(out), ref, atol=2e-2, rtol=2e-2)

    # Ragged batch exercising the sublane-pad + output-slice path (still tiny).
    B2 = 300
    x2 = jax.random.normal(kx2, (B2, IN_F), jnp.float32)
    out2 = jax.block_until_ready(simple_model_forward(x2, w1, b1, w2, b2))
    ref2 = _host_ref(x2, w1, b1, w2, b2)
    assert out2.shape == (B2, OUT_F)
    assert np.allclose(np.asarray(out2), ref2, atol=2e-2, rtol=2e-2)

    print("KERNEL_OK")
</pallas_src>

<mosaic_0001>
module attributes {stable_mosaic.version = 11 : i64} {
  func.func @mlp_kernel(%arg0: i32, %arg1: memref<8x3xf32, #tpu.memory_space<vmem>>, %arg2: memref<3x16xf32, #tpu.memory_space<vmem>>, %arg3: memref<16x1xf32, #tpu.memory_space<vmem>>, %arg4: memref<16x26xf32, #tpu.memory_space<vmem>>, %arg5: memref<1x26xf32, #tpu.memory_space<vmem>>, %arg6: memref<8x26xf32, #tpu.memory_space<vmem>>) attributes {dimension_semantics = [#tpu.dimension_semantics<parallel>], iteration_bounds = array<i64: 1>, scalar_prefetch = 0 : i64, scratch_operands = 0 : i64, tpu.core_type = #tpu.core_type<tc>, window_params = [{transform_indices = @transform_0, window_bounds = array<i64: 8, 3>}, {pipeline_mode = #tpu.pipeline_mode<synchronous>, transform_indices = @transform_1, window_bounds = array<i64: 3, 16>}, {pipeline_mode = #tpu.pipeline_mode<synchronous>, transform_indices = @transform_2, window_bounds = array<i64: 16, 1>}, {pipeline_mode = #tpu.pipeline_mode<synchronous>, transform_indices = @transform_3, window_bounds = array<i64: 16, 26>}, {pipeline_mode = #tpu.pipeline_mode<synchronous>, transform_indices = @transform_4, window_bounds = array<i64: 1, 26>}, {transform_indices = @transform_5, window_bounds = array<i64: 8, 26>}]} {
    %c0 = arith.constant 0 : index
    %c0_0 = arith.constant 0 : index
    %0 = vector.load %arg2[%c0, %c0_0] : memref<3x16xf32, #tpu.memory_space<vmem>>, vector<3x16xf32>
    %c0_1 = arith.constant 0 : index
    %c0_2 = arith.constant 0 : index
    %1 = vector.load %arg1[%c0_1, %c0_2] : memref<8x3xf32, #tpu.memory_space<vmem>>, vector<8x3xf32>
    %cst = arith.constant dense<0.000000e+00> : vector<16x8xf32>
    %2 = tpu.matmul %0, %1, %cst {dimension_numbers = #tpu.dot_dimension_numbers<[0], [1], [1], [0], [0, 1, 1, 0], [], []>} : vector<3x16xf32>, vector<8x3xf32>, vector<16x8xf32> -> vector<16x8xf32>
    %c0_3 = arith.constant 0 : index
    %c0_4 = arith.constant 0 : index
    %3 = vector.load %arg3[%c0_3, %c0_4] : memref<16x1xf32, #tpu.memory_space<vmem>>, vector<16x1xf32>
    %4 = vector.broadcast %3 : vector<16x1xf32> to vector<16x8xf32>
    %5 = arith.addf %2, %4 : vector<16x8xf32>
    %cst_5 = arith.constant 0.000000e+00 : f32
    %6 = vector.broadcast %cst_5 : f32 to vector<16x8xf32>
    %7 = arith.maximumf %5, %6 : vector<16x8xf32>
    %c0_6 = arith.constant 0 : index
    %c0_7 = arith.constant 0 : index
    %8 = vector.load %arg4[%c0_6, %c0_7] : memref<16x26xf32, #tpu.memory_space<vmem>>, vector<16x26xf32>
    %cst_8 = arith.constant dense<0.000000e+00> : vector<8x26xf32>
    %9 = tpu.matmul %7, %8, %cst_8 {dimension_numbers = #tpu.dot_dimension_numbers<[0], [0], [1], [1], [0, 1, 1, 1], [], []>} : vector<16x8xf32>, vector<16x26xf32>, vector<8x26xf32> -> vector<8x26xf32>
    %c0_9 = arith.constant 0 : index
    %c0_10 = arith.constant 0 : index
    %10 = vector.load %arg5[%c0_9, %c0_10] : memref<1x26xf32, #tpu.memory_space<vmem>>, vector<1x26xf32>
    %11 = vector.broadcast %10 : vector<1x26xf32> to vector<8x26xf32>
    %12 = arith.addf %9, %11 : vector<8x26xf32>
    %c0_11 = arith.constant 0 : index
    %c0_12 = arith.constant 0 : index
    %13 = vector.load %arg6[%c0_11, %c0_12] : memref<8x26xf32, #tpu.memory_space<vmem>>, vector<8x26xf32>
    tpu.vector_store %arg6[%c0_11, %c0_12], %12 {strides = array<i32>} : memref<8x26xf32, #tpu.memory_space<vmem>>, vector<8x26xf32>,
    return
  }
  func.func @transform_0(%arg0: i32) -> (i32, i32) {
    %c0_i32 = arith.constant 0 : i32
    %c0_i32_0 = arith.constant 0 : i32
    return %arg0, %c0_i32 : i32, i32
  }
  func.func @transform_1(%arg0: i32) -> (i32, i32) {
    %c0_i32 = arith.constant 0 : i32
    %c0_i32_0 = arith.constant 0 : i32
    %c0_i32_1 = arith.constant 0 : i32
    return %c0_i32, %c0_i32_0 : i32, i32
  }
  func.func @transform_2(%arg0: i32) -> (i32, i32) {
    %c0_i32 = arith.constant 0 : i32
    %c0_i32_0 = arith.constant 0 : i32
    %c0_i32_1 = arith.constant 0 : i32
    return %c0_i32, %c0_i32_0 : i32, i32
  }
  func.func @transform_3(%arg0: i32) -> (i32, i32) {
    %c0_i32 = arith.constant 0 : i32
    %c0_i32_0 = arith.constant 0 : i32
    %c0_i32_1 = arith.constant 0 : i32
    return %c0_i32, %c0_i32_0 : i32, i32
  }
  func.func @transform_4(%arg0: i32) -> (i32, i32) {
    %c0_i32 = arith.constant 0 : i32
    %c0_i32_0 = arith.constant 0 : i32
    %c0_i32_1 = arith.constant 0 : i32
    return %c0_i32, %c0_i32_0 : i32, i32
  }
  func.func @transform_5(%arg0: i32) -> (i32, i32) {
    %c0_i32 = arith.constant 0 : i32
    %c0_i32_0 = arith.constant 0 : i32
    return %arg0, %c0_i32 : i32, i32
  }
}

</mosaic_0001>

<bundles_post_ra>
// kernel: simple_model_forward.1
= control target key start
LH: loop header
LB: loop body
LE: loop exit
PB: predicated region body
PF: predicated region fallthrough
CT: control target
= control target key end

     0   :  { %vm67_vm0 = vcmask 23552   ;;  %s275_s0 = inlined_call_operand.vmem [shape: f32[8,3], index: 0, kind: input, shape index: {}]   ;;  %s276_s1 = inlined_call_operand.vmem [shape: f32[3,16], index: 1, kind: input, shape index: {}]   ;;  %s277_s2 = inlined_call_operand.vmem [shape: f32[16,1], index: 2, kind: input, shape index: {}]   ;;  %s278_s3 = inlined_call_operand.vmem [shape: f32[16,26], index: 3, kind: input, shape index: {}]   ;;  %s279_s4 = inlined_call_operand.vmem [shape: f32[1,26], index: 4, kind: input, shape index: {}]   ;;  %s280_s5 = inlined_call_operand.hbm [shape: f32[8,26], index: 5, kind: output, shape index: {}]  }
   0x1   :  { %v21_v0 = vld [vmem:[%s276_s1] sm:$0x7] }
   0x2   :  { %v22_v1 = vld [vmem:[%s275_s0] sm:$0xff]  ;;  %35 = vxpose.xlu0.b32.start.end [1/1] (short) (narrow) %v21_v0, 16 }
   0x3   :  { %182 = vmatpush.xpose.msk.msra.mxu0 %vm67_vm0, %v22_v1 }
   0x4   :  { %10 = vsyncpa [#allocation3], 0  ;;  %186 = vmatpush.xpose.msk.msra.mxu2 %vm67_vm0, %v22_v1  ;;  %v23_v2 = vld [vmem:[%s277_s2] sm:$0xff]  ;;  %v24_v3 = vld [vmem:[%s277_s2 + $0x8] sm:$0xff]  ;;  %v219_v4 = vmov 0   ;;  %vm140_vm1 = vcmask 130048  }
   0x5   :  { %191 = vset.pattern.permute.xlu1 %v219_v4  ;;  %v103_v7 = vld [vmem:[%s278_s3 + $0x8] sm:$0xff]  ;;  %v102_v8 = vld [vmem:[%s278_s3] sm:$0xff]  ;;  %s220_s3 = smov [#allocation2]   ;;  %s173_s7 = sshll.u32 %s280_s5, 4  ;;  %vm164_vm2 = vcmask 211968   ;;  %s174_s7 = int_to_ptr.hbm [resolvable:$true] %s173_s7 }
   0x6   :  { %32 = vperm.xlu1 %191, %v24_v3   ;;  %158 = vmatpush.msra.mxu1 %v103_v7  ;;  %v192_v18 = vld [vmem:[%s279_s4] ss:$0 sm:$0xff]  ;;  %s171_s29 = sshll.u32 %s220_s3, 4  ;;  %s172_s29 = int_to_ptr.vmem [resolvable:$true] %s171_s29 }
   0x8   :  { %159 = vmatpush.msra.mxu1 %v102_v8 }
  0x69   :  { %190 = vset.pattern.permute.xlu0 %v219_v4 }
  0x78   :  { %27 = vperm.xlu0 %190, %v23_v2   ;;  %v33_v13 = vpop.permute.xlu1 %32 }
  0xa6   :  { %v51_v5 = vpop.trf.xlu0 }
  0xa7   :  { %183 = vmatmul.msk.f32.vlgmr.msra.gmra.mxu0 %vm67_vm0, %v51_v5 }
  0xae   :  { %v52_v6 = vpop.trf.xlu0 }
  0xaf   :  { %184 = vmatmul.msk.f32.vlgmr.msra.gmra.mxu2 %vm67_vm0, %v52_v6 }
  0xea   :  { %v28_v9 = vpop.permute.xlu0 %27 }
 0x124   :  { %v94_v10 = vpop.f32.mrf.mxu0 }
 0x125   :  { %v95_v11 = vadd.f32 %v94_v10, %v28_v9 }
 0x127   :  { %v100_v12 = vmax.f32 %v95_v11, 0.0 }
 0x129   :  { %108 = vxpose.xlu1.b32.start [1/2] (short) (narrow) %v100_v12, 8 }
 0x132   :  { %v97_v14 = vpop.f32.mrf.mxu2 }
 0x133   :  { %v98_v15 = vadd.f32 %v97_v14, %v33_v13 }
 0x135   :  { %v101_v16 = vmax.f32 %v98_v15, 0.0 }
 0x137   :  { %109 = vxpose.xlu1.b32.end [2/2] (short) (narrow) %v101_v16, 8 }
 0x1d3   :  { %v124_v17 = vpop.trf.xlu1 }
 0x1d4   :  { %185 = vmatmul.msk.f32.vlgmr.msra.gmra.mxu1 %vm140_vm1, %v124_v17 }
 0x251   :  { %v161_v19 = vpop.f32.mrf.mxu1 }
 0x252   :  { %v162_v20 = vadd.f32 %v192_v18, %v161_v19 }
 0x254   :  { %165 = vst.msk [vmem:[#allocation2] sm:$0xff] %vm164_vm2, %v162_v20 }
 0x255   :  { %176 = dma.vmem_to_hbm [thread:$0]  %s172_s29, 128, %s174_s7, [#allocation3]  }
 0x256   :  { %217 = dma.done.wait [#allocation3], 128  }
 0x257   :  { %218 = vsyncadd [#allocation3], 4294967168 }
 0x258   :  { %181 = vsyncpa [#allocation3], 1 }

</bundles_post_ra>
